<compile_context>
chip_gen: v6e
topology: v6e:2x2x1
jax: 0.10.0
libtpu: 0.0.40
codegen_flags: <defaults>
</compile_context>

<pallas_src>
import functools
import math

import jax
import jax.numpy as jnp
import numpy as np
from jax import lax
from jax.experimental import pallas as pl
from jax.experimental.pallas import tpu as pltpu


# ----------------------------------------------------------------------------
# Pallas kernel: fused Linear -> GELU(tanh) -> AvgPool(as matmul) -> Linear
# Grid = (frame, n_tile over the W2 output dim).
# ----------------------------------------------------------------------------
def _projector_pool_kernel(x_ref, w1t_ref, b1_ref, pool_ref, w2t_ref, b2_ref,
                           o_ref, ph_ref):
    # n == 0: compute the pooled GELU intermediate once per frame and cache it
    # in VMEM scratch; later n-tiles only run their slice of the W2 matmul.
    @pl.when(pl.program_id(1) == 0)
    def _():
        x = x_ref[0]                                    # (S_in, C_mm) bf16
        h = jnp.dot(x, w1t_ref[...],
                    preferred_element_type=jnp.float32) + b1_ref[...]
        # tanh-approx GELU (EUP); torch default is exact erf -> tiny numeric diff.
        c = 0.7978845608028654  # sqrt(2/pi)
        h = 0.5 * h * (1.0 + jnp.tanh(c * (h + 0.044715 * h * h * h)))
        # AvgPool2d(stride) as a matmul, hoisted before W2.
        # Exact: pool is linear and each row sums to 1, so b2 passes through.
        ph_ref[...] = jnp.dot(pool_ref[...], h.astype(jnp.bfloat16),
                              preferred_element_type=jnp.float32
                              ).astype(jnp.bfloat16)    # (S_out, Hmid)

    o = jnp.dot(ph_ref[...], w2t_ref[...],
                preferred_element_type=jnp.float32) + b2_ref[...]
    o_ref[0] = o.astype(o_ref.dtype)                    # (S_out, tn)


def _make_pool_matrix(H, W, stride):
    """Matrix form of nn.AvgPool2d(kernel=stride, stride=stride) over flat (H*W)."""
    Hp, Wp = H // stride, W // stride
    P = np.zeros((Hp * Wp, H * W), dtype=np.float32)
    inv = 1.0 / (stride * stride)
    for i in range(Hp):
        for j in range(Wp):
            o = i * Wp + j
            for di in range(stride):
                for dj in range(stride):
                    P[o, (i * stride + di) * W + (j * stride + dj)] = inv
    return jnp.asarray(P)


def _pick_n_tile(H, preferred=512):
    """Largest multiple of 128 that divides H and is <= preferred; else full H."""
    if H % 128 != 0:
        return H
    t = min((preferred // 128) * 128, H)
    while t >= 128:
        if H % t == 0:
            return t
        t -= 128
    return H


def prepare_projector_params(params, num_patches_per_side, pool_stride):
    """Hoist per-call prep (transposes, casts, pool matrix) out of the forward."""
    return {
        "w1t": params["linear_1_w"].astype(jnp.bfloat16).T,     # (C_mm, Hmid)
        "b1": params["linear_1_b"].astype(jnp.float32).reshape(1, -1),
        "w2t": params["linear_2_w"].astype(jnp.bfloat16).T,     # (Hmid, Hout)
        "b2": params["linear_2_b"].astype(jnp.float32).reshape(1, -1),
        "pool": _make_pool_matrix(num_patches_per_side, num_patches_per_side,
                                  pool_stride).astype(jnp.bfloat16),
        "image_newline": params["image_newline"].astype(jnp.bfloat16),
    }


def projector_and_pool(vision_feats, proj):
    """vision_feats: (F, S_in, C_mm) -> pooled (F, S_out, Hout) bf16."""
    F, S_in, C_mm = vision_feats.shape
    Hmid = proj["w1t"].shape[1]
    Hout = proj["w2t"].shape[1]
    S_out = proj["pool"].shape[0]
    tn = _pick_n_tile(Hout)
    NT = Hout // tn

    # TODO(synk): production S_in=729 / S_out=169 are not multiples of 8 sublanes;
    # pad them to 736/176 on the wrapper side for fully unmasked stores.
    x = vision_feats.astype(jnp.bfloat16)

    return pl.pallas_call(
        _projector_pool_kernel,
        out_shape=jax.ShapeDtypeStruct((F, S_out, Hout), jnp.bfloat16),
        grid_spec=pltpu.PrefetchScalarGridSpec(
            num_scalar_prefetch=0,
            grid=(F, NT),
            in_specs=[
                pl.BlockSpec((1, S_in, C_mm), lambda f, n: (f, 0, 0)),   # x
                pl.BlockSpec((C_mm, Hmid), lambda f, n: (0, 0)),         # W1^T
                pl.BlockSpec((1, Hmid), lambda f, n: (0, 0)),            # b1
                pl.BlockSpec((S_out, S_in), lambda f, n: (0, 0)),        # pool
                pl.BlockSpec((Hmid, tn), lambda f, n: (0, n)),           # W2^T tile
                pl.BlockSpec((1, tn), lambda f, n: (0, n)),              # b2 tile
            ],
            out_specs=pl.BlockSpec((1, S_out, tn), lambda f, n: (f, 0, n)),
            scratch_shapes=[pltpu.VMEM((S_out, Hmid), jnp.bfloat16)],
        ),
        compiler_params=pltpu.CompilerParams(
            dimension_semantics=("parallel", "arbitrary"),
            vmem_limit_bytes=64 * 1024 * 1024,
        ),
    )(x, proj["w1t"], proj["b1"], proj["pool"], proj["w2t"], proj["b2"])


# ----------------------------------------------------------------------------
# encode_images: projector + resampler (Pallas) + lane-dense newline/layout glue
# ----------------------------------------------------------------------------
def encode_images(vision_feats, proj, num_patches_per_side, pool_stride):
    # TODO(synk): SigLip vision tower not implemented; `vision_feats` is its
    # per-frame patch output flattened to (F, nps*nps, mm_hidden).
    F = vision_feats.shape[0]
    D = proj["w2t"].shape[1]
    rh = num_patches_per_side // pool_stride
    rw = rh

    pooled = projector_and_pool(vision_feats, proj)          # (F, rh*rw, D) bf16

    # Final torch layout (flattened): token[c*(F*rh) + f*rh + r] = pooled[f, r, c]
    # for c < rw; c == rw is image_newline.  Keep D lane-dense the whole time;
    # only the two small leading dims get transposed.
    feat = pooled.reshape(F * rh, rw, D)
    feat = jnp.transpose(feat, (1, 0, 2))                    # (rw, F*rh, D)
    newline = jnp.broadcast_to(
        proj["image_newline"].astype(feat.dtype).reshape(1, 1, D), (1, F * rh, D))
    feat = jnp.concatenate([feat, newline], axis=0)          # (rw+1, F*rh, D)
    return feat.reshape((rw + 1) * F * rh, D)


# ----------------------------------------------------------------------------
# forward (EXTEND mode, batch size 1) — jit-safe, no host syncs
# ----------------------------------------------------------------------------
def llava_vid_forward(input_ids, positions, vision_feats, image_offset,
                      params, proj, *, num_patches_per_side, pool_stride,
                      image_feature_len):
    input_embeds = jnp.take(params["embed_tokens"], input_ids, axis=0)  # (T, D)
    if vision_feats is None:         # Python-level "pixel_values is None" check
        return input_embeds

    # need_vision = positions[extend_start_loc] < image_feature_len (traced).
    need_vision = positions[0] < image_feature_len

    def _with_vision(embeds):
        feat = encode_images(vision_feats, proj, num_patches_per_side, pool_stride)
        # start_idx = 0 (extend_start_loc for batch size 1) + image_offset
        return lax.dynamic_update_slice(
            embeds, feat.astype(embeds.dtype), (image_offset, 0))

    merged = lax.cond(need_vision, _with_vision, lambda e: e, input_embeds)
    # TODO(synk): Qwen2ForCausalLM transformer forward not implemented; return
    # the merged input_embeds that would be fed to the language model.
    return merged


# ----------------------------------------------------------------------------
# Pure-JAX (f32) reference of the same math (pool applied AFTER W2, as torch does)
# ----------------------------------------------------------------------------
def _reference_forward(input_ids, vision_feats, image_offset, params,
                       nps, stride):
    emb = jnp.take(params["embed_tokens"].astype(jnp.float32), input_ids, axis=0)
    x = vision_feats.astype(jnp.float32)
    w1 = params["linear_1_w"].astype(jnp.float32)
    b1 = params["linear_1_b"].astype(jnp.float32)
    w2 = params["linear_2_w"].astype(jnp.float32)
    b2 = params["linear_2_b"].astype(jnp.float32)
    h = x @ w1.T + b1
    c = 0.7978845608028654
    h = 0.5 * h * (1.0 + jnp.tanh(c * (h + 0.044715 * h ** 3)))
    y = h @ w2.T + b2                                        # (F, S_in, D)
    F = x.shape[0]
    D = w2.shape[0]
    rh = nps // stride
    rw = rh
    y = y.reshape(F, rh, stride, rw, stride, D).mean(axis=(2, 4))  # (F, rh, rw, D)
    feat = jnp.transpose(y.reshape(F * rh, rw, D), (1, 0, 2))
    newline = jnp.broadcast_to(
        params["image_newline"].astype(jnp.float32).reshape(1, 1, D), (1, F * rh, D))
    feat = jnp.concatenate([feat, newline], axis=0).reshape(-1, D)
    return emb.at[image_offset:image_offset + feat.shape[0]].set(feat)


if __name__ == "__main__":
    key = jax.random.PRNGKey(0)

    # Small config consistent with the module's shapes.
    num_frames = 2
    num_patches_per_side = 8        # image_size // patch_size
    mm_hidden_size = 32             # config.mm_hidden_size (vision feature dim)
    hidden_size = 32                # config.hidden_size (text model dim)
    mm_spatial_pool_stride = 2
    vocab_size = 128

    rh = num_patches_per_side // mm_spatial_pool_stride
    image_feature_len = num_frames * rh * (rh + 1)   # as in pad_input_ids (incl. newlines)

    ks = iter(jax.random.split(key, 8))
    # Torch module is .half(); on TPU we use bf16 as the half-precision dtype.
    params = {
        "linear_1_w": (jax.random.normal(next(ks), (hidden_size, mm_hidden_size)) * 0.05).astype(jnp.bfloat16),
        "linear_1_b": (jax.random.normal(next(ks), (hidden_size,)) * 0.05).astype(jnp.bfloat16),
        "linear_2_w": (jax.random.normal(next(ks), (hidden_size, hidden_size)) * 0.05).astype(jnp.bfloat16),
        "linear_2_b": (jax.random.normal(next(ks), (hidden_size,)) * 0.05).astype(jnp.bfloat16),
        "image_newline": (jax.random.normal(next(ks), (hidden_size,)) * 0.05).astype(jnp.bfloat16),
        "embed_tokens": (jax.random.normal(next(ks), (vocab_size, hidden_size)) * 0.05).astype(jnp.bfloat16),
    }
    proj = prepare_projector_params(params, num_patches_per_side, mm_spatial_pool_stride)

    # Vision-tower output for one video: (frames, num_patches, mm_hidden)
    vision_feats = (jax.random.normal(
        next(ks), (num_frames, num_patches_per_side * num_patches_per_side, mm_hidden_size)
    ) * 0.1).astype(jnp.bfloat16)

    prefix_len, suffix_len = 3, 5
    image_offset = prefix_len
    total_tokens = prefix_len + image_feature_len + suffix_len
    input_ids = jax.random.randint(next(ks), (total_tokens,), 0, vocab_size, dtype=jnp.int32)
    positions = jnp.arange(total_tokens, dtype=jnp.int32)

    fwd = jax.jit(functools.partial(
        llava_vid_forward,
        num_patches_per_side=num_patches_per_side,
        pool_stride=mm_spatial_pool_stride,
        image_feature_len=image_feature_len,
    ))
    out = fwd(input_ids, positions, vision_feats, jnp.int32(image_offset), params, proj)
    jax.block_until_ready(out)

    assert out.shape == (total_tokens, hidden_size) and out.dtype == jnp.bfloat16

    ref = _reference_forward(input_ids, vision_feats, image_offset, params,
                             num_patches_per_side, mm_spatial_pool_stride)
    np.testing.assert_allclose(np.asarray(out, dtype=np.float32),
                               np.asarray(ref, dtype=np.float32),
                               rtol=1e-1, atol=3e-2)
    print("KERNEL_OK")
</pallas_src>

<mosaic_0001>
module attributes {stable_mosaic.version = 11 : i64} {
  func.func @_projector_pool_kernel(%arg0: i32, %arg1: i32, %arg2: memref<1x64x32xbf16, #tpu.memory_space<vmem>>, %arg3: memref<32x32xbf16, #tpu.memory_space<vmem>>, %arg4: memref<1x32xf32, #tpu.memory_space<vmem>>, %arg5: memref<16x64xbf16, #tpu.memory_space<vmem>>, %arg6: memref<32x32xbf16, #tpu.memory_space<vmem>>, %arg7: memref<1x32xf32, #tpu.memory_space<vmem>>, %arg8: memref<1x16x32xbf16, #tpu.memory_space<vmem>>, %arg9: memref<16x32xbf16, #tpu.memory_space<vmem>>) attributes {dimension_semantics = [#tpu.dimension_semantics<parallel>, #tpu.dimension_semantics<arbitrary>], iteration_bounds = array<i64: 2, 1>, scalar_prefetch = 0 : i64, scratch_operands = 1 : i64, tpu.core_type = #tpu.core_type<tc>, window_params = [{transform_indices = @transform_0, window_bounds = array<i64: 1, 64, 32>}, {pipeline_mode = #tpu.pipeline_mode<synchronous>, transform_indices = @transform_1, window_bounds = array<i64: 32, 32>}, {pipeline_mode = #tpu.pipeline_mode<synchronous>, transform_indices = @transform_2, window_bounds = array<i64: 1, 32>}, {pipeline_mode = #tpu.pipeline_mode<synchronous>, transform_indices = @transform_3, window_bounds = array<i64: 16, 64>}, {transform_indices = @transform_4, window_bounds = array<i64: 32, 32>}, {transform_indices = @transform_5, window_bounds = array<i64: 1, 32>}, {transform_indices = @transform_6, window_bounds = array<i64: 1, 16, 32>}]} {
    %c0_i32 = arith.constant 0 : i32
    %0 = arith.cmpi eq, %arg1, %c0_i32 : i32
    %1 = arith.extui %0 : i1 to i32
    %c0_i32_0 = arith.constant 0 : i32
    %2 = arith.cmpi ne, %1, %c0_i32_0 : i32
    scf.if %2 {
      %c0_9 = arith.constant 0 : index
      %c0_10 = arith.constant 0 : index
      %c0_11 = arith.constant 0 : index
      %13 = vector.load %arg2[%c0_9, %c0_10, %c0_11] : memref<1x64x32xbf16, #tpu.memory_space<vmem>>, vector<1x64x32xbf16>
      %14 = vector.shape_cast %13 : vector<1x64x32xbf16> to vector<64x32xbf16>
      %c0_12 = arith.constant 0 : index
      %c0_13 = arith.constant 0 : index
      %15 = vector.load %arg3[%c0_12, %c0_13] : memref<32x32xbf16, #tpu.memory_space<vmem>>, vector<32x32xbf16>
      %cst_14 = arith.constant dense<0.000000e+00> : vector<64x32xf32>
      %16 = tpu.matmul %14, %15, %cst_14 {dimension_numbers = #tpu.dot_dimension_numbers<[1], [0], [0], [1], [0, 0, 1, 1], [], []>} : vector<64x32xbf16>, vector<32x32xbf16>, vector<64x32xf32> -> vector<64x32xf32>
      %c0_15 = arith.constant 0 : index
      %c0_16 = arith.constant 0 : index
      %17 = vector.load %arg4[%c0_15, %c0_16] : memref<1x32xf32, #tpu.memory_space<vmem>>, vector<1x32xf32>
      %18 = vector.broadcast %17 : vector<1x32xf32> to vector<64x32xf32>
      %19 = arith.addf %16, %18 : vector<64x32xf32>
      %cst_17 = arith.constant 5.000000e-01 : f32
      %20 = vector.broadcast %cst_17 : f32 to vector<64x32xf32>
      %21 = arith.mulf %20, %19 : vector<64x32xf32>
      %cst_18 = arith.constant 4.471500e-02 : f32
      %22 = vector.broadcast %cst_18 : f32 to vector<64x32xf32>
      %23 = arith.mulf %22, %19 : vector<64x32xf32>
      %24 = arith.mulf %23, %19 : vector<64x32xf32>
      %25 = arith.mulf %24, %19 : vector<64x32xf32>
      %26 = arith.addf %19, %25 : vector<64x32xf32>
      %cst_19 = arith.constant 0.797884583 : f32
      %27 = vector.broadcast %cst_19 : f32 to vector<64x32xf32>
      %28 = arith.mulf %27, %26 : vector<64x32xf32>
      %29 = math.tanh %28 : vector<64x32xf32>
      %cst_20 = arith.constant 1.000000e+00 : f32
      %30 = vector.broadcast %cst_20 : f32 to vector<64x32xf32>
      %31 = arith.addf %30, %29 : vector<64x32xf32>
      %32 = arith.mulf %21, %31 : vector<64x32xf32>
      %c0_21 = arith.constant 0 : index
      %c0_22 = arith.constant 0 : index
      %33 = vector.load %arg5[%c0_21, %c0_22] : memref<16x64xbf16, #tpu.memory_space<vmem>>, vector<16x64xbf16>
      %34 = arith.truncf %32 : vector<64x32xf32> to vector<64x32xbf16>
      %cst_23 = arith.constant dense<0.000000e+00> : vector<16x32xf32>
      %35 = tpu.matmul %33, %34, %cst_23 {dimension_numbers = #tpu.dot_dimension_numbers<[1], [0], [0], [1], [0, 0, 1, 1], [], []>} : vector<16x64xbf16>, vector<64x32xbf16>, vector<16x32xf32> -> vector<16x32xf32>
      %36 = arith.truncf %35 : vector<16x32xf32> to vector<16x32xbf16>
      %c0_24 = arith.constant 0 : index
      %c0_25 = arith.constant 0 : index
      %37 = vector.load %arg9[%c0_24, %c0_25] : memref<16x32xbf16, #tpu.memory_space<vmem>>, vector<16x32xbf16>
      tpu.vector_store %arg9[%c0_24, %c0_25], %36 {strides = array<i32>} : memref<16x32xbf16, #tpu.memory_space<vmem>>, vector<16x32xbf16>,
    } else {
    }
    %c0 = arith.constant 0 : index
    %c0_1 = arith.constant 0 : index
    %3 = vector.load %arg9[%c0, %c0_1] : memref<16x32xbf16, #tpu.memory_space<vmem>>, vector<16x32xbf16>
    %c0_2 = arith.constant 0 : index
    %c0_3 = arith.constant 0 : index
    %4 = vector.load %arg6[%c0_2, %c0_3] : memref<32x32xbf16, #tpu.memory_space<vmem>>, vector<32x32xbf16>
    %cst = arith.constant dense<0.000000e+00> : vector<16x32xf32>
    %5 = tpu.matmul %3, %4, %cst {dimension_numbers = #tpu.dot_dimension_numbers<[1], [0], [0], [1], [0, 0, 1, 1], [], []>} : vector<16x32xbf16>, vector<32x32xbf16>, vector<16x32xf32> -> vector<16x32xf32>
    %c0_4 = arith.constant 0 : index
    %c0_5 = arith.constant 0 : index
    %6 = vector.load %arg7[%c0_4, %c0_5] : memref<1x32xf32, #tpu.memory_space<vmem>>, vector<1x32xf32>
    %7 = vector.broadcast %6 : vector<1x32xf32> to vector<16x32xf32>
    %8 = arith.addf %5, %7 : vector<16x32xf32>
    %9 = arith.truncf %8 : vector<16x32xf32> to vector<16x32xbf16>
    %c0_6 = arith.constant 0 : index
    %c0_7 = arith.constant 0 : index
    %c0_8 = arith.constant 0 : index
    %10 = vector.load %arg8[%c0_6, %c0_7, %c0_8] : memref<1x16x32xbf16, #tpu.memory_space<vmem>>, vector<1x16x32xbf16>
    %11 = vector.shape_cast %10 : vector<1x16x32xbf16> to vector<16x32xbf16>
    %12 = vector.shape_cast %9 : vector<16x32xbf16> to vector<1x16x32xbf16>
    tpu.vector_store %arg8[%c0_6, %c0_7, %c0_8], %12 {strides = array<i32>} : memref<1x16x32xbf16, #tpu.memory_space<vmem>>, vector<1x16x32xbf16>,
    return
  }
  func.func @transform_0(%arg0: i32, %arg1: i32) -> (i32, i32, i32) {
    %c0_i32 = arith.constant 0 : i32
    %c0_i32_0 = arith.constant 0 : i32
    %c0_i32_1 = arith.constant 0 : i32
    return %arg0, %c0_i32, %c0_i32_0 : i32, i32, i32
  }
  func.func @transform_1(%arg0: i32, %arg1: i32) -> (i32, i32) {
    %c0_i32 = arith.constant 0 : i32
    %c0_i32_0 = arith.constant 0 : i32
    %c0_i32_1 = arith.constant 0 : i32
    return %c0_i32, %c0_i32_0 : i32, i32
  }
  func.func @transform_2(%arg0: i32, %arg1: i32) -> (i32, i32) {
    %c0_i32 = arith.constant 0 : i32
    %c0_i32_0 = arith.constant 0 : i32
    %c0_i32_1 = arith.constant 0 : i32
    return %c0_i32, %c0_i32_0 : i32, i32
  }
  func.func @transform_3(%arg0: i32, %arg1: i32) -> (i32, i32) {
    %c0_i32 = arith.constant 0 : i32
    %c0_i32_0 = arith.constant 0 : i32
    %c0_i32_1 = arith.constant 0 : i32
    return %c0_i32, %c0_i32_0 : i32, i32
  }
  func.func @transform_4(%arg0: i32, %arg1: i32) -> (i32, i32) {
    %c0_i32 = arith.constant 0 : i32
    %c0_i32_0 = arith.constant 0 : i32
    return %c0_i32, %arg1 : i32, i32
  }
  func.func @transform_5(%arg0: i32, %arg1: i32) -> (i32, i32) {
    %c0_i32 = arith.constant 0 : i32
    %c0_i32_0 = arith.constant 0 : i32
    return %c0_i32, %arg1 : i32, i32
  }
  func.func @transform_6(%arg0: i32, %arg1: i32) -> (i32, i32, i32) {
    %c0_i32 = arith.constant 0 : i32
    %c0_i32_0 = arith.constant 0 : i32
    return %arg0, %c0_i32, %arg1 : i32, i32, i32
  }
}

</mosaic_0001>

<bundles_post_ra>
// kernel: branch_1_fun.1
= control target key start
LH: loop header
LB: loop body
LE: loop exit
PB: predicated region body
PF: predicated region fallthrough
CT: control target
= control target key end

     0   :  { %s967_s21 = smov 0   ;;  %s969_s22 = smov 0   ;;  %s1077_s0 = inlined_call_operand.vmem [shape: bf16[2,64,32], index: 0, kind: input, shape index: {}]   ;;  %s1078_s1 = inlined_call_operand.vmem [shape: bf16[32,32], index: 1, kind: input, shape index: {}]   ;;  %s1079_s2 = inlined_call_operand.vmem [shape: f32[1,32], index: 2, kind: input, shape index: {}]   ;;  %s1080_s3 = inlined_call_operand.vmem [shape: bf16[16,64], index: 3, kind: input, shape index: {}]   ;;  %s1081_s4 = inlined_call_operand.vmem [shape: bf16[32,32], index: 4, kind: input, shape index: {}]   ;;  %s1082_s5 = inlined_call_operand.vmem [shape: f32[1,32], index: 5, kind: input, shape index: {}]   ;;  %s1083_s6 = inlined_call_operand.vmem [shape: bf16[2,16,32], index: 6, kind: output, shape index: {}]  }
   0x1   :  { %s971_s23 = smov 0  }
   0x2 LB: > { %s28_s24 = sadd.s32 1, %s924_s22  ;;  %p773_p0 = scmp.ge.s32.totalorder %s928_s23, 1  ;;  %s928_s23 = sphi %s971_s23, %s16_s23   ;;  %s924_s22 = sphi %s969_s22, %s1085_s22   ;;  %s920_s21 = sphi %s967_s21, %s1084_s21  }
   0x3   : > { %p30_p1 = scmp.ge.s32.totalorder %s28_s24, 2  ;;  %p243_p2 = scmp.lt.s32.totalorder %s928_s23, 3 }
   0x5   : > { %s1087_s24 = smov (%p30_p1, %s28_s24), 0  ;;  %p244_p3 = pnand %p773_p0, %p243_p2 }
   0x6   : > { %p283_p4 = scmp.lt.s32.totalorder (!%p244_p3), %s920_s21, 1 }
   0x7   : > { %247 = sbr.rel (%p244_p3) target bundleno = 682 (0x2aa), region = 44 }
   0xc   : > { %v880_v0 = vld [vmem:[%s1078_s1 + $0x8] sm:$0xff]   ;;  %v881_v1 = vld [vmem:[%s1078_s1] sm:$0xff]   ;;  %s1089_s21 = smov (!%p283_p4, %s920_s21), 1  ;;  %vm359_vm0 = vcmask 261120   ;;  %v930_v6 = vmov 0.0   ;;  %vm931_vm1 = vmmov 0  }
   0xd   : > { %822 = vmatprep.subr.bf16.mxu0 %v880_v0  ;;  %s802_s29 = sshll.u32 %s1089_s21, 5  ;;  %834 = vmatprep.subr.bf16.mxu1 %v930_v6  ;;  %v778_v8 = vld [vmem:[%s1079_s2] ss:$0 sm:$0xff]  ;;  %vm520_vm2 = vcmask 523264   ;;  %vm573_vm3 = vcmask 257024   ;;  %s803_s19 = sshll.u32 %s1089_s21, 3 }
   0xe   : > { %823 = vmatpush3.bf16.msra.mxu0 %v880_v0  ;;  %s287_s8 = scalar_lea.vmem %s1077_s0, %s802_s29  ;;  %842 = vmatprep.mubr.msk.bf16.mxu1 %vm931_vm1, %v930_v6  ;;  %s302_s26 = scalar_lea.vmem %s1083_s6, %s803_s19 }
   0xf   : > { %824 = vmatprep.subr.bf16.mxu0 %v881_v1  ;;  %v882_v2 = vld [vmem:[%s287_s8] sm:$0xff]   ;;  %v883_v3 = vld [vmem:[%s287_s8 + $0x8] sm:$0xff]   ;;  %v884_v4 = vld [vmem:[%s287_s8 + $0x10] sm:$0xff]  }
  0x10   : > { %826 = vmatprep.mubr.msk.bf16.mxu0 %vm359_vm0, %v882_v2  ;;  %v885_v5 = vld [vmem:[%s287_s8 + $0x18] sm:$0xff]  }
  0x12   : > { %825 = vmatpush3.bf16.msra.mxu0 %v881_v1 }
  0x13   : > { %846 = vmatprep.subr.bf16.mxu0 %v930_v6 }
  0x15   : > { %827 = vmatmul.mubr.msk.bf16.vlgmr.msra.gmra.mxu0 %vm359_vm0, %v883_v3 }
  0x16   : > { %830 = vmatprep.mubr.msk.bf16.mxu0 %vm359_vm0, %v884_v4 }
  0x1d   : > { %831 = vmatmul.mubr.msk.bf16.gmra.mxu0 %vm359_vm0, %v885_v5 }
  0x1e   : > { %850 = vmatprep.mubr.msk.bf16.mxu0 %vm931_vm1, %v930_v6 }
  0xd5   : > { %v828_v7 = vpop.f32.mrf.mxu0 }
  0xd6   : > { %v1008_v11 = vadd.f32 %v828_v7, %v778_v8 }
  0xd7   : > { %v406_v9 = vpop.f32.mrf.mxu0 }
  0xd8   : > { %v1015_v16 = vadd.f32 %v778_v8, %v406_v9  ;;  %v447_v18 = vmul.f32 0.044715, %v1008_v11 }
  0xd9   : > { %v829_v10 = vpop.f32.mrf.mxu0 }
  0xda   : > { %v1010_v12 = vadd.f32 %v829_v10, %v778_v8  ;;  %v445_v25 = vmul.f32 0.044715, %v1015_v16  ;;  %v455_v27 = vmul.f32 %v447_v18, %v1008_v11 }
  0xdb   : > { %v409_v13 = vpop.f32.mrf.mxu0 }
  0xdc   : > { %v448_v14 = vmul.f32 0.044715, %v1010_v12  ;;  %v1013_v15 = vadd.f32 %v778_v8, %v409_v13  ;;  %v453_v37 = vmul.f32 %v445_v25, %v1015_v16  ;;  %v463_v39 = vmul.f32 %v455_v27, %v1008_v11 }
  0xdd   : > { %v832_v17 = vpop.f32.mrf.mxu0 }
  0xde   : > { %v431_v19 = vadd.f32 %v832_v17, %v778_v8  ;;  %v456_v20 = vmul.f32 %v448_v14, %v1010_v12  ;;  %v446_v22 = vmul.f32 0.044715, %v1013_v15  ;;  %v461_v49 = vmul.f32 %v453_v37, %v1015_v16 }
  0xdf   : > { %v422_v21 = vpop.f32.mrf.mxu0  ;;  %v471_v54 = vadd.f32 %v463_v39, %v1008_v11  ;;  %v437_v37 = vmul.f32 0.5, %v1015_v16 }
  0xe0   : > { %v451_v23 = vmul.f32 0.044715, %v431_v19  ;;  %v1020_v24 = vadd.f32 %v778_v8, %v422_v21  ;;  %v464_v31 = vmul.f32 %v456_v20, %v1010_v12  ;;  %v454_v33 = vmul.f32 %v446_v22, %v1013_v15 }
  0xe1   : > { %v833_v26 = vpop.f32.mrf.mxu0  ;;  %v479_v60 = vmul.f32 0.7978846, %v471_v54  ;;  %v469_v61 = vadd.f32 %v461_v49, %v1015_v16  ;;  %v443_v5 = vmul.f32 0.5, %v431_v19  ;;  %v888_v16 = vld [vmem:[%s1081_s4] sm:$0xff]  }
  0xe2   : > { %v459_v28 = vmul.f32 %v451_v23, %v431_v19  ;;  %v449_v29 = vmul.f32 0.044715, %v1020_v24  ;;  %v434_v30 = vadd.f32 %v833_v26, %v778_v8  ;;  %v472_v44 = vadd.f32 %v464_v31, %v1010_v12 }
  0xe3   : > { %v425_v32 = vpop.f32.mrf.mxu0  ;;  %v462_v45 = vmul.f32 %v454_v33, %v1013_v15  ;;  %v477_v63 = vmul.f32 0.7978846, %v469_v61  ;;  %v441_v22 = vmul.f32 0.5, %v1020_v24  ;;  %v439_v31 = vmul.f32 0.5, %v1008_v11  ;;  %v886_v11 = vld [vmem:[%s1080_s3] sm:$0xff]  }
  0xe4   : > { %v457_v34 = vmul.f32 %v449_v29, %v1020_v24  ;;  %v452_v35 = vmul.f32 0.044715, %v434_v30  ;;  %v426_v36 = vadd.f32 %v778_v8, %v425_v32  ;;  %v467_v38 = vmul.f32 %v459_v28, %v431_v19 }
  0xe5   : > { %v480_v55 = vmul.f32 0.7978846, %v472_v44  ;;  %v470_v58 = vadd.f32 %v462_v45, %v1013_v15  ;;  %v444_v7 = vmul.f32 0.5, %v434_v30  ;;  %v440_v28 = vmul.f32 0.5, %v1010_v12 }
  0xe6   : > { %v465_v40 = vmul.f32 %v457_v34, %v1020_v24  ;;  %v460_v41 = vmul.f32 %v452_v35, %v434_v30  ;;  %v450_v42 = vmul.f32 0.044715, %v426_v36  ;;  %v475_v43 = vadd.f32 %v467_v38, %v431_v19 }
  0xe7   : > { %v478_v62 = vmul.f32 0.7978846, %v470_v58  ;;  %v442_v10 = vmul.f32 0.5, %v426_v36 }
  0xe8   : > { %v458_v46 = vmul.f32 %v450_v42, %v426_v36  ;;  %v468_v47 = vmul.f32 %v460_v41, %v434_v30  ;;  %v473_v48 = vadd.f32 %v465_v40, %v1020_v24  ;;  %v483_v50 = vmul.f32 0.7978846, %v475_v43 }
  0xe9   : > { %v438_v24 = vmul.f32 0.5, %v1013_v15  ;;  %v887_v15 = vld [vmem:[%s1081_s4 + $0x8] sm:$0xff]  }
  0xea   : > { %v466_v51 = vmul.f32 %v458_v46, %v426_v36  ;;  %v476_v52 = vadd.f32 %v468_v47, %v434_v30  ;;  %v481_v53 = vmul.f32 0.7978846, %v473_v48  ;;  %890 = vtanh.f32 %v483_v50  ;;  %847 = vmatpush3.bf16.msra.mxu0 %v887_v15 }
  0xeb   : > { %848 = vmatprep.subr.bf16.mxu0 %v930_v6 }
  0xec   : > { %v484_v56 = vmul.f32 0.7978846, %v476_v52  ;;  %v474_v57 = vadd.f32 %v466_v51, %v426_v36  ;;  %892 = vtanh.f32 %v481_v53 }
  0xee   : > { %894 = vtanh.f32 %v484_v56  ;;  %v482_v59 = vmul.f32 0.7978846, %v474_v57  ;;  %849 = vmatpush3.bf16.msra.mxu0 %v888_v16 }
  0xef   : > { %896 = vtanh.f32 %v480_v55 }
  0xf0   : > { %898 = vtanh.f32 %v482_v59 }
  0xf1   : > { %900 = vtanh.f32 %v479_v60 }
  0xf2   : > { %902 = vtanh.f32 %v478_v62 }
  0xf3   : > { %904 = vtanh.f32 %v477_v63 }
  0xf7   : > { %v891_v0 = vpop.eup %890 }
  0xf8   : > { %v499_v2 = vadd.f32 1.0, %v891_v0 }
  0xf9   : > { %v893_v1 = vpop.eup %892 }
  0xfa   : > { %v507_v13 = vmul.f32 %v499_v2, %v443_v5  ;;  %v497_v17 = vadd.f32 1.0, %v893_v1 }
  0xfb   : > { %v895_v3 = vpop.eup %894 }
  0xfc   : > { %v897_v4 = vpop.eup %896  ;;  %v500_v8 = vadd.f32 1.0, %v895_v3  ;;  %v505_v27 = vmul.f32 %v497_v17, %v441_v22 }
  0xfd   : > { %v899_v9 = vpop.eup %898  ;;  %v496_v25 = vadd.f32 1.0, %v897_v4 }
  0xfe   : > { %v508_v14 = vmul.f32 %v500_v8, %v444_v7  ;;  %v498_v18 = vadd.f32 1.0, %v899_v9  ;;  %v901_v20 = vpop.eup %900 }
  0xff   : > { %v903_v26 = vpop.eup %902  ;;  %v495_v19 = vadd.f32 1.0, %v901_v20  ;;  %v504_v32 = vmul.f32 %v496_v25, %v440_v28 }
 0x100   : > { %v514_v21 = vpack.c.bf16 %v508_v14, %v507_v13  ;;  %v506_v23 = vmul.f32 %v498_v18, %v442_v10  ;;  %v905_v29 = vpop.eup %904  ;;  %v494_v33 = vadd.f32 1.0, %v903_v26 }
 0x101   : > { %v503_v34 = vmul.f32 %v495_v19, %v439_v31  ;;  %v493_v35 = vadd.f32 1.0, %v905_v29 }
 0x102   : > { %835 = vmatpush3.bf16.msra.mxu1 %v514_v21  ;;  %v513_v30 = vpack.c.bf16 %v506_v23, %v505_v27  ;;  %v502_v12 = vmul.f32 %v494_v33, %v438_v24 }
 0x103   : > { %836 = vmatprep.subr.bf16.mxu1 %v930_v6  ;;  %v512_v36 = vpack.c.bf16 %v504_v32, %v503_v34  ;;  %v501_v38 = vmul.f32 %v493_v35, %v437_v37 }
 0x105   : > { %v511_v39 = vpack.c.bf16 %v502_v12, %v501_v38 }
 0x106   : > { %837 = vmatpush3.bf16.msra.mxu1 %v513_v30 }
 0x107   : > { %838 = vmatprep.subr.bf16.mxu1 %v930_v6 }
 0x10a   : > { %839 = vmatpush3.bf16.msra.mxu1 %v512_v36 }
 0x10b   : > { %840 = vmatprep.subr.bf16.mxu1 %v930_v6  ;;  %v793_v6 = vld [vmem:[%s1082_s5] ss:$0 sm:$0xff] }
 0x10e   : > { %841 = vmatpush3.bf16.msra.mxu1 %v511_v39 }
 0x111   : > { %843 = vmatmul.mubr.msk.bf16.vlgmr.msra.gmra.mxu1 %vm520_vm2, %v886_v11 }
 0x1d1   : > { %v558_v40 = vpop.f32.mrf.mxu1 }
 0x1d2   : > { %v804_v41 = vpack.c.bf16 %v558_v40, %v558_v40 }
 0x1d3   : > { %v844_v42 = vpop.f32.mrf.mxu1 }
 0x1d4   : > { %574 = vst.msk [vmem:[#allocation2] sm:$0xf] %vm573_vm3, %v804_v41 }
 0x1d5   : > { %v561_v43 = vpop.f32.mrf.mxu1 }
 0x1d6   : > { %v805_v44 = vpack.c.bf16 %v561_v43, %v561_v43 }
 0x1d7   : > { %v845_v45 = vpop.f32.mrf.mxu1 }
 0x1d8   : > { %575 = vst.msk [vmem:[#allocation2 + $0x4] sm:$0xf] %vm573_vm3, %v805_v44 }
 0x1df   : > { %v889_v46 = vld [vmem:[#allocation2] sm:$0xff]  }
 0x1e0   : > { %851 = vmatmul.mubr.msk.bf16.vlgmr.msra.gmra.mxu0 %vm359_vm0, %v889_v46 }
 0x2a0   : > { %v644_v47 = vpop.f32.mrf.mxu0 }
 0x2a1   : > { %v645_v48 = vadd.f32 %v793_v6, %v644_v47 }
 0x2a2   : > { %v852_v49 = vpop.f32.mrf.mxu0 }
 0x2a3   : > { %v806_v50 = vpack.c.bf16 %v645_v48, %v645_v48 }
 0x2a4   : > { %v647_v51 = vpop.f32.mrf.mxu0 }
 0x2a5   : > { %660 = vst.msk [vmem:[%s302_s26] sm:$0xf] %vm573_vm3, %v806_v50  ;;  %v648_v52 = vadd.f32 %v793_v6, %v647_v51 }
 0x2a6   : > { %v853_v53 = vpop.f32.mrf.mxu0 }
 0x2a7   : > { %v807_v54 = vpack.c.bf16 %v648_v52, %v648_v52 }
 0x2a9   : > { %661 = vst.msk [vmem:[%s302_s26 + $0x4] sm:$0xf] %vm573_vm3, %v807_v54 }
 0x2aa PF: > { %s16_s23 = sadd.s32 1, %s928_s23   ;;  %s1084_s21 = smov %s924_s22 }
 0x2ab   : > { %p13_p5 = scmp.ge.s32.totalorder %s16_s23, 4   ;;  %s1085_s22 = smov %s1087_s24 }
 0x2ad   :  { %15 = sbr.rel (!%p13_p5) target bundleno = 2 (0x2), region = 84 }

</bundles_post_ra>
